<compile_context>
chip_gen: v7x
topology: tpu7x:2x2x1
jax: 0.10.0
libtpu: 0.0.40
codegen_flags: <defaults>
</compile_context>

<pallas_src>
import functools

import jax
import jax.numpy as jnp
from jax.experimental import pallas as pl
from jax.experimental.pallas import tpu as pltpu


def ca_layer_kernel(x_ref, w1_ref, b1_ref, w2_ref, b2_ref, out_ref, *, inv_hw):
    # x_ref  : (Nb, C, HWp)  inputs; channels on sublanes, flattened spatial on lanes
    # w1_ref : (C, Cr)       squeeze weight  == conv_du[0].weight[:, :, 0, 0].T
    # b1_ref : (1, Cr)       squeeze bias
    # w2_ref : (C, Cr)       excite weight   == conv_du[2].weight[:, :, 0, 0]
    # b2_ref : (C, 1)        excite bias
    # out_ref: (Nb, C, HWp)  x * sigmoid(excite(relu(squeeze(avgpool(x)))))

    # Global average pool over the spatial (lane) axis; accumulate in f32 even for
    # bf16 inputs.  Zero-padded lanes (HW -> HWp) add 0 to the sum and inv_hw is
    # 1/true_HW, so the mean is exact.
    pooled = jnp.sum(x_ref[...].astype(jnp.float32), axis=2, keepdims=True) * inv_hw  # (Nb, C, 1)

    # Squeeze (1x1 conv C -> Cr): broadcast-mul + sublane reduce, then ReLU.
    z1 = jnp.sum(pooled * w1_ref[...][None], axis=1, keepdims=True)                    # (Nb, 1, Cr)
    z1 = jnp.maximum(z1 + b1_ref[...], 0.0)

    # Excite (1x1 conv Cr -> C): broadcast-mul + lane reduce, then Sigmoid.
    z2 = jnp.sum(z1 * w2_ref[...][None], axis=2, keepdims=True) + b2_ref[...]          # (Nb, C, 1)
    scale = pl.reciprocal(1.0 + jnp.exp(-z2), approx=True)                             # EUP slot

    # Per-channel rescale broadcast across the lane-dense spatial axis.  Re-read x_ref
    # (don't reuse the pooled load) so the block isn't kept live in vregs across the
    # SE computation; VMEM re-loads are nearly free (3 vld slots/cycle).
    out_ref[...] = (x_ref[...] * scale).astype(out_ref.dtype)


def ca_layer_flat(x_flat, w1, b1_row, w2, b2_col):
    """x_flat: (N, C, HW) f32/bf16; w1, w2: (C, Cr) f32; b1_row: (1, Cr); b2_col: (C, 1)."""
    N, C, HW = x_flat.shape
    Cr = w1.shape[1]
    itemsize = jnp.dtype(x_flat.dtype).itemsize

    # Lane-density guard: pad the spatial axis to a multiple of 128 so loads/stores
    # are unmasked full-lane streams (mean stays exact: kernel divides by true HW).
    hwp = ((HW + 127) // 128) * 128
    if hwp != HW:
        x_flat = jnp.pad(x_flat, ((0, 0), (0, 0), (0, hwp - HW)))

    # Images per grid step: target ~2 MiB of in+out traffic per step (hides the
    # ~0.35 us fixed per-step overhead), but keep >= 2 grid steps whenever N > 1 so
    # both v7x TensorCores get work.
    per_image_bytes = 2 * C * hwp * itemsize                       # in + out
    nb = max(1, min(N, (2 << 20) // per_image_bytes, (N + 1) // 2))
    grid_n = -(-N // nb)
    n_pad = grid_n * nb
    if n_pad != N:                                                 # ragged tail: zero-pad, crop below
        x_flat = jnp.pad(x_flat, ((0, n_pad - N), (0, 0), (0, 0)))

    # Explicit scoped-VMEM budget: 2 double-buffered (in + out) blocks + weights +
    # slack, floored at 32 MiB, capped at 48 MiB so v7x (64 MiB physical) keeps headroom.
    blk_bytes = nb * C * hwp * itemsize
    vmem_limit = int(min(max(4 * blk_bytes + (4 << 20), 32 << 20), 48 << 20))

    def const_spec(shape):
        # Weights/biases have constant index maps: a second pipeline buffer is wasted
        # VMEM, so request single-buffering.
        return pl.BlockSpec(shape, lambda n: (0, 0), pipeline_mode=pl.Buffered(1))

    y = pl.pallas_call(
        functools.partial(ca_layer_kernel, inv_hw=1.0 / float(HW)),
        out_shape=jax.ShapeDtypeStruct((n_pad, C, hwp), x_flat.dtype),
        grid_spec=pltpu.PrefetchScalarGridSpec(
            num_scalar_prefetch=0,
            grid=(grid_n,),
            in_specs=[
                pl.BlockSpec((nb, C, hwp), lambda n: (n, 0, 0)),
                const_spec((C, Cr)),
                const_spec((1, Cr)),
                const_spec((C, Cr)),
                const_spec((C, 1)),
            ],
            out_specs=pl.BlockSpec((nb, C, hwp), lambda n: (n, 0, 0)),
        ),
        compiler_params=pltpu.CompilerParams(
            dimension_semantics=("parallel",),
            vmem_limit_bytes=vmem_limit,
        ),
    )(x_flat, w1, b1_row, w2, b2_col)

    if n_pad != N or hwp != HW:
        y = y[:N, :, :HW]
    return y


def ca_layer_nchw(x_nchw, w1, b1, w2, b2):
    """PyTorch-facing wrapper: NCHW in -> NCHW out (same shape & dtype).

    w1: (C, Cr) = conv_du[0].weight[:, :, 0, 0].T    b1: (Cr,) = conv_du[0].bias
    w2: (C, Cr) = conv_du[2].weight[:, :, 0, 0]      b2: (C,)  = conv_du[2].bias
    bf16 activations are accepted (compute stays f32, output matches input dtype).
    """
    N, C, H, W = x_nchw.shape
    Cr = w1.shape[1]
    x_flat = x_nchw.reshape(N, C, H * W)            # contiguous reshape, no transpose
    y_flat = ca_layer_flat(x_flat, w1, b1.reshape(1, Cr), w2, b2.reshape(C, 1))
    return y_flat.reshape(N, C, H, W)


if __name__ == "__main__":
    # reduction=16 requires C >= 16 -> C=64 (Cr=4), small spatial 16x16.
    C, reduction = 64, 16
    Cr = C // reduction

    key = jax.random.PRNGKey(0)
    kx, kw1, kb1, kw2, kb2, kx2 = jax.random.split(key, 6)

    # PyTorch Conv2d-default-like param scale: U(-1/sqrt(fan_in), +1/sqrt(fan_in)).
    bnd1 = 1.0 / jnp.sqrt(jnp.float32(C))     # fan_in of 1x1 conv C -> Cr
    bnd2 = 1.0 / jnp.sqrt(jnp.float32(Cr))    # fan_in of 1x1 conv Cr -> C
    w1 = jax.random.uniform(kw1, (C, Cr), jnp.float32, -bnd1, bnd1)
    b1 = jax.random.uniform(kb1, (Cr,), jnp.float32, -bnd1, bnd1)
    w2 = jax.random.uniform(kw2, (C, Cr), jnp.float32, -bnd2, bnd2)
    b2 = jax.random.uniform(kb2, (C,), jnp.float32, -bnd2, bnd2)

    def reference(x):
        pooled = jnp.mean(x.astype(jnp.float32), axis=(2, 3))               # (N, C)
        z1 = jnp.einsum("nc,cr->nr", pooled, w1,
                        precision=jax.lax.Precision.HIGHEST) + b1
        z1 = jnp.maximum(z1, 0.0)
        z2 = jnp.einsum("nr,cr->nc", z1, w2,
                        precision=jax.lax.Precision.HIGHEST) + b2
        gate = 1.0 / (1.0 + jnp.exp(-z2))
        return x.astype(jnp.float32) * gate[:, :, None, None]

    # Tolerances are sized for the EUP approx-reciprocal gate (small relative error)
    # scaled by |x|*gate; any structural bug would produce O(0.1-1) errors.

    # Case 1: task-spec shapes (N=2 -> one image per step, 2 parallel grid steps).
    x = jax.random.normal(kx, (2, C, 16, 16), dtype=jnp.float32)
    y = jax.block_until_ready(ca_layer_nchw(x, w1, b1, w2, b2))
    assert y.shape == x.shape and y.dtype == x.dtype
    err = float(jnp.max(jnp.abs(y - reference(x))))
    assert err < 2e-2, err

    # Case 2: ragged batch (N=5 -> Nb=3 images per step, zero-pad + crop the tail).
    x5 = jax.random.normal(kx2, (5, C, 16, 16), dtype=jnp.float32)
    y5 = jax.block_until_ready(ca_layer_nchw(x5, w1, b1, w2, b2))
    err5 = float(jnp.max(jnp.abs(y5 - reference(x5))))
    assert err5 < 2e-2, err5

    # Case 3: bf16 activations (halved HBM traffic; compute stays f32 inside).
    xb = jax.random.normal(kx, (4, C, 16, 16), dtype=jnp.bfloat16)
    yb = jax.block_until_ready(ca_layer_nchw(xb, w1, b1, w2, b2))
    assert yb.dtype == jnp.bfloat16
    errb = float(jnp.max(jnp.abs(yb.astype(jnp.float32) - reference(xb))))
    assert errb < 5e-2, errb

    print("KERNEL_OK")
</pallas_src>

<mosaic_0001>
module attributes {stable_mosaic.version = 11 : i64} {
  func.func @ca_layer_kernel(%arg0: i32, %arg1: memref<1x64x256xf32, #tpu.memory_space<vmem>>, %arg2: memref<64x4xf32, #tpu.memory_space<vmem>>, %arg3: memref<1x4xf32, #tpu.memory_space<vmem>>, %arg4: memref<64x4xf32, #tpu.memory_space<vmem>>, %arg5: memref<64x1xf32, #tpu.memory_space<vmem>>, %arg6: memref<1x64x256xf32, #tpu.memory_space<vmem>>) attributes {dimension_semantics = [#tpu.dimension_semantics<parallel>], iteration_bounds = array<i64: 2>, scalar_prefetch = 0 : i64, scratch_operands = 0 : i64, tpu.core_type = #tpu.core_type<tc>, window_params = [{transform_indices = @transform_0, window_bounds = array<i64: 1, 64, 256>}, {pipeline_mode = #tpu.pipeline_mode<synchronous>, transform_indices = @transform_1, window_bounds = array<i64: 64, 4>}, {pipeline_mode = #tpu.pipeline_mode<synchronous>, transform_indices = @transform_2, window_bounds = array<i64: 1, 4>}, {pipeline_mode = #tpu.pipeline_mode<synchronous>, transform_indices = @transform_3, window_bounds = array<i64: 64, 4>}, {pipeline_mode = #tpu.pipeline_mode<synchronous>, transform_indices = @transform_4, window_bounds = array<i64: 64, 1>}, {transform_indices = @transform_5, window_bounds = array<i64: 1, 64, 256>}]} {
    %c0 = arith.constant 0 : index
    %c0_0 = arith.constant 0 : index
    %c0_1 = arith.constant 0 : index
    %0 = vector.load %arg1[%c0, %c0_0, %c0_1] : memref<1x64x256xf32, #tpu.memory_space<vmem>>, vector<1x64x256xf32>
    %cst = arith.constant dense<0.000000e+00> : vector<1x64xf32>
    %1 = vector.multi_reduction <add>, %0, %cst [2] : vector<1x64x256xf32> to vector<1x64xf32>
    %2 = vector.shape_cast %1 : vector<1x64xf32> to vector<1x64x1xf32>
    %cst_2 = arith.constant 3.906250e-03 : f32
    %3 = vector.broadcast %cst_2 : f32 to vector<1x64x1xf32>
    %4 = arith.mulf %2, %3 : vector<1x64x1xf32>
    %c0_3 = arith.constant 0 : index
    %c0_4 = arith.constant 0 : index
    %5 = vector.load %arg2[%c0_3, %c0_4] : memref<64x4xf32, #tpu.memory_space<vmem>>, vector<64x4xf32>
    %6 = vector.shape_cast %5 : vector<64x4xf32> to vector<1x64x4xf32>
    %7 = vector.broadcast %4 : vector<1x64x1xf32> to vector<1x64x4xf32>
    %8 = arith.mulf %7, %6 : vector<1x64x4xf32>
    %cst_5 = arith.constant dense<0.000000e+00> : vector<1x4xf32>
    %9 = vector.multi_reduction <add>, %8, %cst_5 [1] : vector<1x64x4xf32> to vector<1x4xf32>
    %10 = vector.shape_cast %9 : vector<1x4xf32> to vector<1x1x4xf32>
    %c0_6 = arith.constant 0 : index
    %c0_7 = arith.constant 0 : index
    %11 = vector.load %arg3[%c0_6, %c0_7] : memref<1x4xf32, #tpu.memory_space<vmem>>, vector<1x4xf32>
    %12 = vector.shape_cast %11 : vector<1x4xf32> to vector<1x1x4xf32>
    %13 = arith.addf %10, %12 : vector<1x1x4xf32>
    %cst_8 = arith.constant 0.000000e+00 : f32
    %14 = vector.broadcast %cst_8 : f32 to vector<1x1x4xf32>
    %15 = arith.maximumf %13, %14 : vector<1x1x4xf32>
    %c0_9 = arith.constant 0 : index
    %c0_10 = arith.constant 0 : index
    %16 = vector.load %arg4[%c0_9, %c0_10] : memref<64x4xf32, #tpu.memory_space<vmem>>, vector<64x4xf32>
    %17 = vector.shape_cast %16 : vector<64x4xf32> to vector<1x64x4xf32>
    %18 = vector.broadcast %15 : vector<1x1x4xf32> to vector<1x64x4xf32>
    %19 = arith.mulf %18, %17 : vector<1x64x4xf32>
    %cst_11 = arith.constant dense<0.000000e+00> : vector<1x64xf32>
    %20 = vector.multi_reduction <add>, %19, %cst_11 [2] : vector<1x64x4xf32> to vector<1x64xf32>
    %21 = vector.shape_cast %20 : vector<1x64xf32> to vector<1x64x1xf32>
    %c0_12 = arith.constant 0 : index
    %c0_13 = arith.constant 0 : index
    %22 = vector.load %arg5[%c0_12, %c0_13] : memref<64x1xf32, #tpu.memory_space<vmem>>, vector<64x1xf32>
    %23 = vector.shape_cast %22 : vector<64x1xf32> to vector<1x64x1xf32>
    %24 = arith.addf %21, %23 : vector<1x64x1xf32>
    %cst_14 = arith.constant 0.000000e+00 : f32
    %25 = vector.broadcast %cst_14 : f32 to vector<1x64x1xf32>
    %26 = arith.subf %25, %24 : vector<1x64x1xf32>
    %27 = math.exp %26 : vector<1x64x1xf32>
    %cst_15 = arith.constant 1.000000e+00 : f32
    %28 = vector.broadcast %cst_15 : f32 to vector<1x64x1xf32>
    %29 = arith.addf %28, %27 : vector<1x64x1xf32>
    %30 = tpu.reciprocal %29 {approx = true} : vector<1x64x1xf32> -> vector<1x64x1xf32>
    %c0_16 = arith.constant 0 : index
    %c0_17 = arith.constant 0 : index
    %c0_18 = arith.constant 0 : index
    %31 = vector.load %arg1[%c0_16, %c0_17, %c0_18] : memref<1x64x256xf32, #tpu.memory_space<vmem>>, vector<1x64x256xf32>
    %32 = vector.broadcast %30 : vector<1x64x1xf32> to vector<1x64x256xf32>
    %33 = arith.mulf %31, %32 : vector<1x64x256xf32>
    %c0_19 = arith.constant 0 : index
    %c0_20 = arith.constant 0 : index
    %c0_21 = arith.constant 0 : index
    %34 = vector.load %arg6[%c0_19, %c0_20, %c0_21] : memref<1x64x256xf32, #tpu.memory_space<vmem>>, vector<1x64x256xf32>
    tpu.vector_store %arg6[%c0_19, %c0_20, %c0_21], %33 {strides = array<i32>} : memref<1x64x256xf32, #tpu.memory_space<vmem>>, vector<1x64x256xf32>,
    return
  }
  func.func @transform_0(%arg0: i32) -> (i32, i32, i32) {
    %c0_i32 = arith.constant 0 : i32
    %c0_i32_0 = arith.constant 0 : i32
    %c0_i32_1 = arith.constant 0 : i32
    return %arg0, %c0_i32, %c0_i32_0 : i32, i32, i32
  }
  func.func @transform_1(%arg0: i32) -> (i32, i32) {
    %c0_i32 = arith.constant 0 : i32
    %c0_i32_0 = arith.constant 0 : i32
    %c0_i32_1 = arith.constant 0 : i32
    return %c0_i32, %c0_i32_0 : i32, i32
  }
  func.func @transform_2(%arg0: i32) -> (i32, i32) {
    %c0_i32 = arith.constant 0 : i32
    %c0_i32_0 = arith.constant 0 : i32
    %c0_i32_1 = arith.constant 0 : i32
    return %c0_i32, %c0_i32_0 : i32, i32
  }
  func.func @transform_3(%arg0: i32) -> (i32, i32) {
    %c0_i32 = arith.constant 0 : i32
    %c0_i32_0 = arith.constant 0 : i32
    %c0_i32_1 = arith.constant 0 : i32
    return %c0_i32, %c0_i32_0 : i32, i32
  }
  func.func @transform_4(%arg0: i32) -> (i32, i32) {
    %c0_i32 = arith.constant 0 : i32
    %c0_i32_0 = arith.constant 0 : i32
    %c0_i32_1 = arith.constant 0 : i32
    return %c0_i32, %c0_i32_0 : i32, i32
  }
  func.func @transform_5(%arg0: i32) -> (i32, i32, i32) {
    %c0_i32 = arith.constant 0 : i32
    %c0_i32_0 = arith.constant 0 : i32
    %c0_i32_1 = arith.constant 0 : i32
    return %arg0, %c0_i32, %c0_i32_0 : i32, i32, i32
  }
}

</mosaic_0001>

<bundles_post_ra>
// kernel: tpu_custom_call.1
= control target key start
LH: loop header
LB: loop body
LE: loop exit
PB: predicated region body
PF: predicated region fallthrough
CT: control target
= control target key end

     0   :  { %10 = vsyncpa [#allocation3], 0  ;;  %s1167_s0 = inlined_call_operand.hbm [shape: f32[2,64,256], index: 0, kind: input, shape index: {}]   ;;  %s1168_s1 = inlined_call_operand.vmem [shape: f32[64,4], index: 1, kind: input, shape index: {}]   ;;  %s1169_s2 = inlined_call_operand.vmem [shape: f32[1,4], index: 2, kind: input, shape index: {}]   ;;  %s1170_s3 = inlined_call_operand.vmem [shape: f32[64,4], index: 3, kind: input, shape index: {}]   ;;  %s1171_s4 = inlined_call_operand.vmem [shape: f32[64,1], index: 4, kind: input, shape index: {}]   ;;  %s1172_s5 = inlined_call_operand.hbm [shape: f32[2,64,256], index: 5, kind: output, shape index: {}]  }
   0x1   :  { %12 = vsyncpa [#allocation3 + $0x1], 0 }
   0x2   :  { %13 = vsyncpa [#allocation4], 0 }
   0x3   :  { %15 = vsyncpa [#allocation4 + $0x1], 0  ;;  %s827_s18 = smov 0   ;;  %s829_s19 = smov 0  }
   0x4   :  { %s831_s20 = smov 0   ;;  %s833_s21 = smov 0  }
   0x5 LB: > { %s848_s22 = sadd.s32 4294967295, %s788_s21   ;;  %s591_s23 = sadd.s32 4294967294, %s788_s21   ;;  %s788_s21 = sphi %s833_s21, %s1185_s21   ;;  %s784_s20 = sphi %s831_s20, %s1184_s20   ;;  %s780_s19 = sphi %s829_s19, %s1183_s19   ;;  %s776_s18 = sphi %s827_s18, %s1182_s18  }
   0x6   : > { %s852_s24 = sadd.s32 1, %s788_s21   ;;  %s28_s25 = sadd.s32 1, %s784_s20 }
   0x7   : > { %s25_s26 = ssub.s32 %s788_s21, %s852_s24  ;;  %p35_p0 = scmp.ne.s32.totalorder %s784_s20, %s780_s19 }
   0x8   : > { %p26_p1 = scmp.eq.s32.totalorder %s25_s26, 0  ;;  %p36_p2 = scmp.eq.s32.totalorder %s788_s21, 0 }
   0x9   : > { %p41_p3 = scmp.ne.s32.totalorder %s780_s19, %s776_s18  ;;  %p42_p4 = scmp.eq.s32.totalorder %s848_s22, 0 }
   0xa   : > { %s864_s27 = scalar_select %p26_p1, %s784_s20, %s28_s25  }
   0xb   : > { %p866_p5 = por %p36_p2, %p35_p0  ;;  %p870_p6 = por %p42_p4, %p41_p3 }
   0xc   : > { %p149_p7 = scmp.eq.s32.totalorder %s848_s22, 1  ;;  %p155_p8 = scmp.eq.s32.totalorder %s591_s23, 1 }
   0xd   : > { %p619_p10 = scmp.lt.s32.totalorder %s788_s21, 2  ;;  %s187_s7 = sand.u32 1, %s784_s20  }
   0xe   : > { %p877_p11 = por %p149_p7, %p35_p0  ;;  %p881_p12 = por %p155_p8, %p41_p3 }
   0xf   : > { %s605_s8 = sshll.u32 %s788_s21, 11  ;;  %s594_s9 = sshll.u32 %s187_s7, 7 }
  0x10   : > { %s1176_s30 = scalar_select %p877_p11, 1, 0 }
  0x11   : > { %s1177_s6 = scalar_select %p881_p12, 1, 0 }
  0x12   : > { %s890_s12 = scalar_lea.hbm %s1167_s0, %s605_s8  ;;  %s191_s13 = scalar_lea.vmem [#allocation2], %s594_s9 }
  0x13   : > { %s198_s14 = sshll.u32 %s191_s13, 4  ;;  %p894_p13 = pnand %p619_p10, %p866_p5  ;;  %s898_s14 = int_to_ptr.vmem [resolvable:$true] %s198_s14 }
  0x14   : > { %s900_s16 = scalar_lea.sflag [#allocation3], %s187_s7  ;;  %s692_s17 = scalar_lea.hbm %s890_s12, 2048 }
  0x15   : > { %p693_p0 = scmp.ne.s32.totalorder %s890_s12, %s692_s17  ;;  %p694_p1 = pneg %p894_p13 }
  0x16   : > { %s697_s26 = scalar_lea.hbm %s1167_s0, 4096  ;;  %p698_p4 = scmp.lt.u32.totalorder %s890_s12, %s1167_s0 }
  0x17   : > { %p695_p2 = pnand %p694_p1, %p693_p0  ;;  %p699_p5 = scmp.lt.u32.totalorder %s697_s26, %s692_s17 }
  0x18   : > { %p701_p8 = scmp.lt.u32.totalorder %s692_s17, %s890_s12 }
  0x19   : > { %p696_p3 = pneg %p695_p2  ;;  %p700_p7 = por %p699_p5, %p698_p4 }
  0x1b   : > { %p702_p10 = por %p701_p8, %p700_p7 }
  0x1d   : > { %p703_p9 = pnand %p702_p10, %p696_p3 }
  0x1f   : > { %706 = shalt.err (!%p703_p9)
}
  0x20   : > { %s707_s7 = scalar_lea.vmem %s898_s14, 2048  ;;  %s790_s9 = smov [#allocation2]  }
  0x21   : > { %p708_p0 = scmp.ne.s32.totalorder %s898_s14, %s707_s7  ;;  %s712_s10 = sshll.u32 %s790_s9, 4  ;;  %s713_s10 = int_to_ptr.vmem [resolvable:$false] %s712_s10 }
  0x22   : > { %s714_s11 = scalar_lea.vmem %s713_s10, 4096  ;;  %p715_p11 = scmp.lt.s32.totalorder %s898_s14, %s713_s10 }
  0x23   : > { %p710_p2 = pnand %p708_p0, %p694_p1  ;;  %p716_p4 = scmp.lt.s32.totalorder %s714_s11, %s707_s7 }
  0x25   : > { %p711_p12 = pneg %p710_p2  ;;  %p717_p5 = por %p716_p4, %p715_p11 }
  0x27   : > { %p718_p7 = pnand %p717_p5, %p711_p12 }
  0x29   : > { %721 = shalt.err (!%p718_p7)
}
  0x2a   : > { %s791_s13 = smov 256   ;;  %s792_s17 = smov 16  }
  0x2b   : > { %614 = dma.hbm_to_vmem [thread:$0]  (!%p894_p13), %s890_s12, 2048, %s898_s14, %s900_s16, %s791_s13, %s791_s13, %s792_s17  }
  0x2c   : > { %p597_p9 = scmp.ge.s32.totalorder %s788_s21, 1  ;;  %p206_p1 = scmp.lt.s32.totalorder %s788_s21, 3 }
  0x2e   : > { %p207_p3 = pnand %p597_p9, %p206_p1 }
  0x2f   : > { %s931_s23 = sand.u32 (!%p207_p3), 1, %s780_s19  }
  0x30   : > { %210 = sbr.rel (%p207_p3) target bundleno = 587 (0x24b), region = 40  ;;  %s598_s25 = sshll.u32 (!%p207_p3), %s931_s23, 7 }
  0x31   : > { %s213_s26 = scalar_lea.sflag (!%p207_p3), [#allocation3], %s931_s23  ;;  %s216_s28 = scalar_lea.vmem (!%p207_p3), [#allocation2], %s598_s25 }
  0x37   : > { %767 = dma.done.wait (%p870_p6), %s213_s26, 2048  }
  0x38   : > { %769 = vsyncadd (%p870_p6), %s213_s26, 4294965248  ;;  %v941_v0 = vld [vmem:[%s216_s28] sm:$0xff]  ;;  %v943_v1 = vld [vmem:[%s216_s28 + $0x8] sm:$0xff]  ;;  %vm307_vm0 = vcmask 31744   ;;  %s1086_s10 = scalar_lea.vmem [#allocation5], %s598_s25  ;;  %s606_s25 = sshll.u32 %s848_s22, 11 }
  0x39   : > { %v945_v2 = vld [vmem:[%s216_s28 + $0x20] sm:$0xff]  ;;  %v259_v3 = vadd.f32 %v943_v1, %v941_v0  ;;  %v949_v4 = vld [vmem:[%s216_s28 + $0x28] sm:$0xff]  ;;  %v951_v5 = vld [vmem:[%s216_s28 + $0x10] sm:$0xff]  ;;  %s518_s11 = sshll.u32 %s1086_s10, 4  ;;  %s1117_s26 = scalar_lea.hbm %s1172_s5, %s606_s25  ;;  %s1119_s11 = int_to_ptr.vmem [resolvable:$true] %s518_s11 }
  0x3a   : > { %v953_v6 = vld [vmem:[%s216_s28 + $0x18] sm:$0xff]  ;;  %v265_v7 = vadd.f32 %v949_v4, %v945_v2  ;;  %v957_v8 = vld [vmem:[%s216_s28 + $0x30] sm:$0xff]  ;;  %v965_v12 = vld [vmem:[%s216_s28 + $0x40] sm:$0xff]  ;;  %s505_s22 = scalar_lea.sflag [#allocation4], %s931_s23  ;;  %p1179_p11 = scmp.ne.s32.totalorder %s1176_s30, 0 }
  0x3b   : > { %v959_v9 = vld [vmem:[%s216_s28 + $0x38] sm:$0xff]  ;;  %260 = vadd.xlane.f32.xlu0 %v259_v3  ;;  %v262_v10 = vadd.f32 %v953_v6, %v951_v5  ;;  %v967_v13 = vld [vmem:[%s216_s28 + $0x48] sm:$0xff]  ;;  %v969_v14 = vld [vmem:[%s216_s28 + $0x50] sm:$0xff]  ;;  %s794_s29 = smov [#allocation5]  }
  0x3c   : > { %266 = vadd.xlane.f32.xlu1 %v265_v7  ;;  %v268_v11 = vadd.f32 %v959_v9, %v957_v8  ;;  %v971_v15 = vld [vmem:[%s216_s28 + $0x58] sm:$0xff]  ;;  %v271_v16 = vadd.f32 %v967_v13, %v965_v12  ;;  %v977_v18 = vld [vmem:[%s216_s28 + $0x60] sm:$0xff]  ;;  %v979_v19 = vld [vmem:[%s216_s28 + $0x68] sm:$0xff]  ;;  %s726_s12 = sshll.u32 %s794_s29, 4  ;;  %s727_s12 = int_to_ptr.vmem [resolvable:$false] %s726_s12 }
  0x3d   : > { %v274_v17 = vadd.f32 %v971_v15, %v969_v14  ;;  %v981_v20 = vld [vmem:[%s216_s28 + $0x70] sm:$0xff]  ;;  %v983_v21 = vld [vmem:[%s216_s28 + $0x78] sm:$0xff]  ;;  %v277_v22 = vadd.f32 %v979_v19, %v977_v18  ;;  %v291_v27 = vld [vmem:[%s1168_s1] sm:$0xff]  ;;  %s722_s28 = scalar_lea.vmem %s1119_s11, 2048  ;;  %s728_s14 = scalar_lea.vmem %s727_s12, 4096 }
  0x3e   : > { %v280_v23 = vadd.f32 %v983_v21, %v981_v20  ;;  %v293_v29 = vld [vmem:[%s1168_s1 + $0x10] sm:$0xff]  ;;  %v292_v30 = vld [vmem:[%s1168_s1 + $0x8] sm:$0xff]  ;;  %v294_v34 = vld [vmem:[%s1168_s1 + $0x18] sm:$0xff]  ;;  %p723_p6 = scmp.ne.s32.totalorder %s1119_s11, %s722_s28  ;;  %p729_p8 = scmp.lt.s32.totalorder %s1119_s11, %s727_s12 }
  0x3f   : > { %263 = vadd.xlane.f32.xlu0 %v262_v10  ;;  %v295_v40 = vld [vmem:[%s1168_s1 + $0x20] sm:$0xff]  ;;  %v296_v45 = vld [vmem:[%s1168_s1 + $0x28] sm:$0xff]  ;;  %v297_v54 = vld [vmem:[%s1168_s1 + $0x30] sm:$0xff]  ;;  %p730_p10 = scmp.lt.s32.totalorder %s728_s14, %s722_s28 }
  0x40   : > { %269 = vadd.xlane.f32.xlu1 %v268_v11  ;;  %v298_v58 = vld [vmem:[%s1168_s1 + $0x38] sm:$0xff]  ;;  %p724_p12 = pnand %p723_p6, %p1179_p11 }
  0x41   : > { %p731_p0 = por %p730_p10, %p729_p8 }
  0x42   : > { %p725_p13 = pneg %p724_p12 }
  0x43   : > { %272 = vadd.xlane.f32.xlu0 %v271_v16 }
  0x44   : > { %275 = vadd.xlane.f32.xlu1 %v274_v17  ;;  %p732_p2 = pnand %p731_p0, %p725_p13 }
  0x47   : > { %278 = vadd.xlane.f32.xlu0 %v277_v22 }
  0x48   : > { %281 = vadd.xlane.f32.xlu1 %v280_v23 }
  0xc8   : > { %v261_v24 = vpop.xlane.xlu0 %260 }
  0xc9   : > { %v283_v25 = vmul.f32 0.00390625, %v261_v24  ;;  %v267_v26 = vpop.xlane.xlu1 %266 }
  0xca   : > { %v285_v28 = vmul.f32 0.00390625, %v267_v26 }
  0xcb   : > { %v299_v32 = vmul.f32 %v291_v27, %v283_v25  ;;  %v340_v25 = vlaneseq }
  0xcc   : > { %v264_v31 = vpop.xlane.xlu0 %263  ;;  %v301_v37 = vmul.f32 %v293_v29, %v285_v28 }
  0xcd   : > { %v284_v33 = vmul.f32 0.00390625, %v264_v31  ;;  %v270_v35 = vpop.xlane.xlu1 %269  ;;  %v308_v42 = vsel %vm307_vm0, %v299_v32, 0.0  ;;  %v341_v28 = vshrl.u32 %v340_v25, 7 }
  0xce   : > { %v286_v36 = vmul.f32 0.00390625, %v270_v35  ;;  %v311_v49 = vsel %vm307_vm0, %v301_v37, 0.0  ;;  %v333_v35 = vld [vmem:[%s1170_s3 + $0x8] sm:$0xff] }
  0xcf   : > { %v300_v38 = vmul.f32 %v292_v30, %v284_v33  ;;  %v329_v30 = vld [vmem:[%s1169_s2] sm:$0x1]  ;;  %v342_v32 = vsub.s32 0, %v341_v28 }
  0xd0   : > { %v302_v39 = vmul.f32 %v294_v34, %v286_v36  ;;  %v273_v41 = vpop.xlane.xlu0 %272  ;;  %v332_v36 = vld [vmem:[%s1170_s3] sm:$0xff] }
  0xd1   : > { %v309_v43 = vsel %vm307_vm0, %v300_v38, 0.0  ;;  %v287_v44 = vmul.f32 0.00390625, %v273_v41  ;;  %v276_v46 = vpop.xlane.xlu1 %275  ;;  %v335_v38 = vld [vmem:[%s1170_s3 + $0x18] sm:$0xff] }
  0xd2   : > { %v310_v47 = vadd.f32 %v309_v43, %v308_v42  ;;  %v288_v48 = vmul.f32 0.00390625, %v276_v46  ;;  %v313_v50 = vsel %vm307_vm0, %v302_v39, 0.0  ;;  %v334_v39 = vld [vmem:[%s1170_s3 + $0x10] sm:$0xff]  ;;  %v337_v46 = vld [vmem:[%s1170_s3 + $0x28] sm:$0xff] }
  0xd3   : > { %v303_v51 = vmul.f32 %v295_v40, %v287_v44 }
  0xd4   : > { %v312_v52 = vadd.f32 %v311_v49, %v310_v47  ;;  %v304_v53 = vmul.f32 %v296_v45, %v288_v48  ;;  %v279_v55 = vpop.xlane.xlu0 %278  ;;  %v336_v47 = vld [vmem:[%s1170_s3 + $0x20] sm:$0xff] }
  0xd5   : > { %v315_v56 = vsel %vm307_vm0, %v303_v51, 0.0  ;;  %v289_v57 = vmul.f32 0.00390625, %v279_v55  ;;  %v282_v59 = vpop.xlane.xlu1 %281 }
  0xd6   : > { %v314_v60 = vadd.f32 %v313_v50, %v312_v52  ;;  %v290_v61 = vmul.f32 0.00390625, %v282_v59  ;;  %v317_v62 = vsel %vm307_vm0, %v304_v53, 0.0  ;;  %v339_v52 = vld [vmem:[%s1170_s3 + $0x38] sm:$0xff]  ;;  %v338_v53 = vld [vmem:[%s1170_s3 + $0x30] sm:$0xff] }
  0xd7   : > { %v305_v63 = vmul.f32 %v297_v54, %v289_v57 }
  0xd8   : > { %v316_v3 = vadd.f32 %v315_v56, %v314_v60  ;;  %v306_v7 = vmul.f32 %v298_v58, %v290_v61  ;;  %v793_v60 = vmov 0   ;;  %v377_v61 = vld [vmem:[%s1171_s4 + $0x8] sm:$0xff] }
  0xd9   : > { %v319_v10 = vsel %vm307_vm0, %v305_v63, 0.0  ;;  %659 = vset.pattern.permute.xlu1 %v793_v60  ;;  %658 = vset.pattern.permute.xlu0 %v793_v60 }
  0xda   : > { %v318_v11 = vadd.f32 %v317_v62, %v316_v3  ;;  %v321_v16 = vsel %vm307_vm0, %v306_v7, 0.0  ;;  %v376_v62 = vld [vmem:[%s1171_s4] sm:$0xff] }
  0xdc   : > { %v320_v17 = vadd.f32 %v319_v10, %v318_v11  ;;  %v379_v11 = vld [vmem:[%s1171_s4 + $0x18] sm:$0xff] }
  0xde   : > { %v322_v22 = vadd.f32 %v321_v16, %v320_v17  ;;  %v378_v16 = vld [vmem:[%s1171_s4 + $0x10] sm:$0xff] }
  0xe0   : > { %v323_v23 = vrot.slane %v322_v22, 4 }
  0xe2   : > { %v324_v24 = vadd.f32 %v323_v23, %v322_v22 }
  0xe4   : > { %v325_v26 = vrot.slane %v324_v24, 2 }
  0xe6   : > { %v326_v27 = vadd.f32 %v325_v26, %v324_v24 }
  0xe8   : > { %v327_v29 = vrot.slane %v326_v27, 1 }
  0xea   : > { %v328_v31 = vadd.f32 %v327_v29, %v326_v27  ;;  %v381_v29 = vld [vmem:[%s1171_s4 + $0x28] sm:$0xff] }
  0xec   : > { %v330_v33 = vadd.f32 %v329_v30, %v328_v31  ;;  %v380_v30 = vld [vmem:[%s1171_s4 + $0x20] sm:$0xff] }
  0xee   : > { %v331_v34 = vmax.f32 %v330_v33, 0.0 }
  0xf0   : > { %v343_v37 = vrot.slane %v331_v34, %v342_v32 }
  0xf2   : > { %v345_v40 = vmul.f32 %v343_v37, %v333_v35  ;;  %v344_v41 = vmul.f32 %v343_v37, %v332_v36  ;;  %v347_v44 = vmul.f32 %v343_v37, %v335_v38  ;;  %v346_v45 = vmul.f32 %v343_v37, %v334_v39  ;;  %v382_v39 = vld [vmem:[%s1171_s4 + $0x30] sm:$0xff] }
  0xf3   : > { %v349_v50 = vmul.f32 %v343_v37, %v337_v46  ;;  %v348_v51 = vmul.f32 %v343_v37, %v336_v47  ;;  %v351_v56 = vmul.f32 %v343_v37, %v339_v52  ;;  %v350_v57 = vmul.f32 %v343_v37, %v338_v53 }
  0xf4   : > { %v355_v42 = vsel %vm307_vm0, %v345_v40, 0.0  ;;  %v352_v43 = vsel %vm307_vm0, %v344_v41, 0.0  ;;  %v361_v48 = vsel %vm307_vm0, %v347_v44, 0.0  ;;  %v358_v49 = vsel %vm307_vm0, %v346_v45, 0.0  ;;  %v383_v44 = vld [vmem:[%s1171_s4 + $0x38] sm:$0xff] }
  0xf5   : > { %356 = vadd.xlane.f32.xlu1 %v355_v42  ;;  %353 = vadd.xlane.f32.xlu0 %v352_v43  ;;  %v367_v54 = vsel %vm307_vm0, %v349_v50, 0.0  ;;  %v364_v55 = vsel %vm307_vm0, %v348_v51, 0.0  ;;  %v373_v58 = vsel %vm307_vm0, %v351_v56, 0.0  ;;  %v370_v59 = vsel %vm307_vm0, %v350_v57, 0.0 }
  0xf9   : > { %362 = vadd.xlane.f32.xlu1 %v361_v48  ;;  %359 = vadd.xlane.f32.xlu0 %v358_v49 }
  0xfd   : > { %368 = vadd.xlane.f32.xlu1 %v367_v54  ;;  %365 = vadd.xlane.f32.xlu0 %v364_v55 }
 0x101   : > { %374 = vadd.xlane.f32.xlu1 %v373_v58  ;;  %371 = vadd.xlane.f32.xlu0 %v370_v59 }
 0x182   : > { %v357_v63 = vpop.xlane.xlu1 %356  ;;  %v354_v3 = vpop.xlane.xlu0 %353 }
 0x183   : > { %v385_v7 = vadd.f32 %v377_v61, %v357_v63  ;;  %v384_v10 = vadd.f32 %v376_v62, %v354_v3 }
 0x185   : > { %v393_v17 = vsub.f32 0.0, %v385_v7  ;;  %v392_v22 = vsub.f32 0.0, %v384_v10 }
 0x186   : > { %v363_v23 = vpop.xlane.xlu1 %362  ;;  %v360_v24 = vpop.xlane.xlu0 %359 }
 0x187   : > { %v402_v25 = vmul.f32 1.442695, %v393_v17  ;;  %v400_v26 = vmul.f32 1.442695, %v392_v22  ;;  %v387_v27 = vadd.f32 %v379_v11, %v363_v23  ;;  %v386_v28 = vadd.f32 %v378_v16, %v360_v24 }
 0x189   : > { %660 = vpow2.f32 %v402_v25  ;;  %v395_v31 = vsub.f32 0.0, %v387_v27  ;;  %v394_v32 = vsub.f32 0.0, %v386_v28 }
 0x18a   : > { %662 = vpow2.f32 %v400_v26  ;;  %v369_v33 = vpop.xlane.xlu1 %368  ;;  %v366_v34 = vpop.xlane.xlu0 %365 }
 0x18b   : > { %v406_v35 = vmul.f32 1.442695, %v395_v31  ;;  %v404_v36 = vmul.f32 1.442695, %v394_v32  ;;  %v389_v37 = vadd.f32 %v381_v29, %v369_v33  ;;  %v388_v38 = vadd.f32 %v380_v30, %v366_v34 }
 0x18d   : > { %664 = vpow2.f32 %v406_v35  ;;  %v397_v40 = vsub.f32 0.0, %v389_v37  ;;  %v396_v41 = vsub.f32 0.0, %v388_v38 }
 0x18e   : > { %666 = vpow2.f32 %v404_v36  ;;  %v372_v42 = vpop.xlane.xlu0 %371  ;;  %v375_v45 = vpop.xlane.xlu1 %374 }
 0x18f   : > { %v408_v43 = vmul.f32 1.442695, %v396_v41  ;;  %v390_v46 = vadd.f32 %v382_v39, %v372_v42  ;;  %v410_v47 = vmul.f32 1.442695, %v397_v40  ;;  %v391_v48 = vadd.f32 %v383_v44, %v375_v45 }
 0x191   : > { %668 = vpow2.f32 %v408_v43  ;;  %v398_v49 = vsub.f32 0.0, %v390_v46  ;;  %v399_v54 = vsub.f32 0.0, %v391_v48 }
 0x192   : > { %670 = vpow2.f32 %v410_v47 }
 0x193   : > { %v661_v50 = vpop.eup %660  ;;  %v412_v55 = vmul.f32 1.442695, %v398_v49  ;;  %v414_v59 = vmul.f32 1.442695, %v399_v54 }
 0x194   : > { %v663_v51 = vpop.eup %662  ;;  %v417_v52 = vadd.f32 1.0, %v661_v50 }
 0x195   : > { %v416_v53 = vadd.f32 1.0, %v663_v51 }
 0x196   : > { %672 = vrcp.f32 %v417_v52 }
 0x197   : > { %v665_v56 = vpop.eup %664  ;;  %674 = vrcp.f32 %v416_v53 }
 0x198   : > { %v667_v57 = vpop.eup %666  ;;  %676 = vpow2.f32 %v412_v55  ;;  %v419_v60 = vadd.f32 1.0, %v665_v56 }
 0x199   : > { %v418_v58 = vadd.f32 1.0, %v667_v57 }
 0x19b   : > { %678 = vrcp.f32 %v418_v58  ;;  %v669_v61 = vpop.eup %668 }
 0x19c   : > { %680 = vpow2.f32 %v414_v59  ;;  %v671_v62 = vpop.eup %670  ;;  %v420_v63 = vadd.f32 1.0, %v669_v61 }
 0x19d   : > { %682 = vrcp.f32 %v419_v60  ;;  %v421_v10 = vadd.f32 1.0, %v671_v62 }
 0x19e   : > { %684 = vrcp.f32 %v420_v63 }
 0x19f   : > { %686 = vrcp.f32 %v421_v10 }
 0x1a0   : > { %v673_v3 = vpop.eup %672 }
 0x1a1   : > { %v675_v7 = vpop.eup %674  ;;  %439 = vperm.xlu1 %659, %v673_v3  }
 0x1a2   : > { %434 = vperm.xlu0 %658, %v675_v7   ;;  %v677_v11 = vpop.eup %676 }
 0x1a3   : > { %v422_v17 = vadd.f32 1.0, %v677_v11 }
 0x1a5   : > { %v679_v16 = vpop.eup %678  ;;  %688 = vrcp.f32 %v422_v17 }
 0x1a6   : > { %444 = vperm.xlu1 %659, %v679_v16   ;;  %v681_v22 = vpop.eup %680 }
 0x1a7   : > { %v683_v23 = vpop.eup %682  ;;  %v423_v24 = vadd.f32 1.0, %v681_v22 }
 0x1a8   : > { %v685_v25 = vpop.eup %684 }
 0x1a9   : > { %690 = vrcp.f32 %v423_v24  ;;  %v687_v26 = vpop.eup %686 }
 0x1aa   : > { %449 = vperm.xlu1 %659, %v683_v23  }
 0x1ae   : > { %454 = vperm.xlu1 %659, %v685_v25  }
 0x1af   : > { %v689_v27 = vpop.eup %688 }
 0x1b2   : > { %459 = vperm.xlu1 %659, %v687_v26  }
 0x1b3   : > { %v691_v28 = vpop.eup %690 }
 0x1b6   : > { %464 = vperm.xlu1 %659, %v689_v27  }
 0x1ba   : > { %469 = vperm.xlu1 %659, %v691_v28  }
 0x220   : > { %v440_v29 = vpop.permute.xlu1 %439 }
 0x221   : > { %v474_v30 = vmul.f32 %v440_v29, %v951_v5  ;;  %v475_v31 = vmul.f32 %v440_v29, %v953_v6  ;;  %v435_v32 = vpop.permute.xlu0 %434 }
 0x222   : > { %v472_v33 = vmul.f32 %v435_v32, %v941_v0  ;;  %v473_v34 = vmul.f32 %v435_v32, %v943_v1 }
 0x223   : > { %490 = vst [vmem:[%s1086_s10 + $0x10] sm:$0xff] %v474_v30  ;;  %491 = vst [vmem:[%s1086_s10 + $0x18] sm:$0xff] %v475_v31 }
 0x224   : > { %488 = vst [vmem:[%s1086_s10] sm:$0xff] %v472_v33  ;;  %489 = vst [vmem:[%s1086_s10 + $0x8] sm:$0xff] %v473_v34 }
 0x225   : > { %v445_v0 = vpop.permute.xlu1 %444 }
 0x226   : > { %v476_v1 = vmul.f32 %v445_v0, %v945_v2  ;;  %v477_v5 = vmul.f32 %v445_v0, %v949_v4 }
 0x228   : > { %492 = vst [vmem:[%s1086_s10 + $0x20] sm:$0xff] %v476_v1  ;;  %493 = vst [vmem:[%s1086_s10 + $0x28] sm:$0xff] %v477_v5 }
 0x229   : > { %v450_v6 = vpop.permute.xlu1 %449 }
 0x22a   : > { %v478_v35 = vmul.f32 %v450_v6, %v957_v8  ;;  %v479_v36 = vmul.f32 %v450_v6, %v959_v9 }
 0x22c   : > { %494 = vst [vmem:[%s1086_s10 + $0x30] sm:$0xff] %v478_v35  ;;  %495 = vst [vmem:[%s1086_s10 + $0x38] sm:$0xff] %v479_v36 }
 0x22d   : > { %v455_v37 = vpop.permute.xlu1 %454 }
 0x22e   : > { %v480_v2 = vmul.f32 %v455_v37, %v965_v12  ;;  %v481_v4 = vmul.f32 %v455_v37, %v967_v13 }
 0x230   : > { %496 = vst [vmem:[%s1086_s10 + $0x40] sm:$0xff] %v480_v2  ;;  %497 = vst [vmem:[%s1086_s10 + $0x48] sm:$0xff] %v481_v4 }
 0x231   : > { %v460_v38 = vpop.permute.xlu1 %459 }
 0x232   : > { %v482_v39 = vmul.f32 %v460_v38, %v969_v14  ;;  %v483_v8 = vmul.f32 %v460_v38, %v971_v15 }
 0x234   : > { %498 = vst [vmem:[%s1086_s10 + $0x50] sm:$0xff] %v482_v39  ;;  %499 = vst [vmem:[%s1086_s10 + $0x58] sm:$0xff] %v483_v8 }
 0x235   : > { %v465_v9 = vpop.permute.xlu1 %464 }
 0x236   : > { %v484_v40 = vmul.f32 %v465_v9, %v977_v18  ;;  %v485_v12 = vmul.f32 %v465_v9, %v979_v19 }
 0x238   : > { %500 = vst [vmem:[%s1086_s10 + $0x60] sm:$0xff] %v484_v40  ;;  %501 = vst [vmem:[%s1086_s10 + $0x68] sm:$0xff] %v485_v12 }
 0x239   : > { %v470_v13 = vpop.permute.xlu1 %469 }
 0x23a   : > { %v486_v14 = vmul.f32 %v470_v13, %v981_v20  ;;  %v487_v15 = vmul.f32 %v470_v13, %v983_v21 }
 0x23c   : > { %502 = vst [vmem:[%s1086_s10 + $0x70] sm:$0xff] %v486_v14  ;;  %503 = vst [vmem:[%s1086_s10 + $0x78] sm:$0xff] %v487_v15 }
 0x23d   : > { %735 = shalt.err (!%p732_p2)
}
 0x23e   : > { %s736_s15 = scalar_lea.hbm %s1117_s26, 2048  ;;  %s740_s7 = scalar_lea.hbm %s1172_s5, 4096 }
 0x23f   : > { %p737_p4 = scmp.ne.s32.totalorder %s1117_s26, %s736_s15  ;;  %p741_p9 = scmp.lt.u32.totalorder %s1117_s26, %s1172_s5 }
 0x240   : > { %p742_p1 = scmp.lt.u32.totalorder %s740_s7, %s736_s15  ;;  %p744_p6 = scmp.lt.u32.totalorder %s736_s15, %s1117_s26 }
 0x241   : > { %p738_p5 = pnand %p737_p4, %p1179_p11 }
 0x242   : > { %p743_p3 = por %p742_p1, %p741_p9 }
 0x243   : > { %p739_p7 = pneg %p738_p5 }
 0x244   : > { %p745_p12 = por %p744_p6, %p743_p3 }
 0x246   : > { %p746_p13 = pnand %p745_p12, %p739_p7 }
 0x248   : > { %749 = shalt.err (!%p746_p13)
}
 0x249   : > { %s795_s25 = smov 256   ;;  %s796_s13 = smov 16  }
 0x24a   : > { %609 = dma.vmem_to_hbm [thread:$0]  (%p1179_p11), %s1119_s11, 2048, %s1117_s26, %s505_s22, %s795_s25, %s795_s25, %s796_s13  }
 0x24b PF: > { %s533_s17 = sand.u32 1, %s776_s18   ;;  %p1180_p8 = scmp.ne.s32.totalorder %s1177_s6, 0 }
 0x24c   : > { %p1181_p10 = scmp.ge.s32.totalorder %s788_s21, 2  ;;  %s534_s28 = scalar_lea.sflag [#allocation4], %s533_s17 }
 0x24e   : > { %p616_p0 = pnand %p1181_p10, %p1180_p8 }
 0x250   : > { %771 = dma.done.wait (!%p616_p0), %s534_s28, 2048  }
 0x251   : > { %773 = vsyncadd (!%p616_p0), %s534_s28, 4294965248  ;;  %p18_p2 = scmp.ge.s32.totalorder %s852_s24, 4   ;;  %s1182_s18 = smov %s780_s19 }
 0x252   : > { %s1183_s19 = smov %s784_s20  ;;  %s1184_s20 = smov %s864_s27 }
 0x253   : > { %s1185_s21 = smov %s852_s24  ;;  %20 = sbr.rel (!%p18_p2) target bundleno = 5 (0x5), region = 85 }
 0x25a   :  { %539 = vsyncpa [#allocation3], 1 }
 0x25b   :  { %541 = vsyncpa [#allocation3 + $0x1], 1 }
 0x25c   :  { %542 = vsyncpa [#allocation4], 1 }
 0x25d   :  { %544 = vsyncpa [#allocation4 + $0x1], 1 }

</bundles_post_ra>
